<compile_context>
chip_gen: v6e
topology: v6e:2x2x1
jax: 0.10.0
libtpu: 0.0.40
codegen_flags: <defaults>
</compile_context>

<pallas_src>
import jax
import jax.numpy as jnp
from jax import lax
from jax.experimental import pallas as pl
from jax.experimental.pallas import tpu as pltpu


def _concretize_kernel(mid_ref, rad_ref, l_ref, u_ref, out_ref):
    """Concretize one tile of symbolic equations against the input box.

    mid_ref / rad_ref : (8, D+1) f32.  Row 0 = [midpoint..., 1.0] and
                        [radius..., 0.0] (bias folded in); rows 1..7 are zero
                        padding so the MXU LHS is sublane-aligned.
    l_ref / u_ref     : (tile_n, D+1) f32 symbolic lower/upper equations.
    out_ref           : (2, tile_n) f32; row 0 = conc_lb, row 1 = conc_ub.
    """
    mid8 = mid_ref[...]
    rad8 = rad_ref[...]
    l_eq = l_ref[...]
    u_eq = u_ref[...]

    # Contract over the input-variable (lane) axis of both operands:
    #   (8, D+1) x (tile_n, D+1) -> (8, tile_n)     (A @ B.T on the MXU)
    dims = (((1,), (1,)), ((), ()))

    def dot_t(a, b):
        return lax.dot_general(a, b, dimension_numbers=dims,
                               preferred_element_type=jnp.float32)

    # Rows 1..7 of mid8/rad8 are zero, so row 0 of each product carries the
    # result and is already lane-dense (neurons along the lane axis).
    clb = dot_t(mid8, l_eq) - dot_t(rad8, jnp.abs(l_eq))
    cub = dot_t(mid8, u_eq) + dot_t(rad8, jnp.abs(u_eq))

    out_ref[0:1, :] = clb[0:1, :]
    out_ref[1:2, :] = cub[0:1, :]


def _choose_tile_n(n_neurons, d1, max_tile_n):
    """Largest lane-aligned row tile whose double-buffered working set fits VMEM."""
    # Double-buffered l/u equation blocks dominate: 2 arrays x 2 buffers x f32.
    budget_bytes = 24 * 1024 * 1024            # headroom under the 32 MiB scoped default (v7x-safe)
    per_row_bytes = 2 * 2 * d1 * 4
    cap = max(128, (budget_bytes // per_row_bytes) // 128 * 128)
    tile = max(128, (int(min(max_tile_n, cap)) // 128) * 128)
    if n_neurons <= tile:
        return n_neurons                        # single full-extent block (always legal)
    return tile                                 # multiple of 128; last grid step may be ragged


def concretize(l_eq, u_eq, in_lb, in_ub, *, max_tile_n=1024):
    """Concretize symbolic bounds.

    l_eq, u_eq   : [N, D+1] float32 (coefficients, last column = bias)
    in_lb, in_ub : [1, D] (or [D]) float32 input box
    returns (conc_lb, conc_ub), each [N] float32
    """
    l_eq = jnp.asarray(l_eq, jnp.float32)
    u_eq = jnp.asarray(u_eq, jnp.float32)
    n_neurons, d1 = l_eq.shape
    d = d1 - 1

    in_lb = jnp.asarray(in_lb, jnp.float32).reshape(1, d)
    in_ub = jnp.asarray(in_ub, jnp.float32).reshape(1, d)

    # Midpoint/radius form with the bias folded in as an extra "input" fixed
    # at mid = 1, rad = 0  (b*1 - |b|*0 == b  and  b*1 + |b|*0 == b).
    mid = (in_lb + in_ub) * 0.5
    rad = (in_ub - in_lb) * 0.5
    mid1 = jnp.concatenate([mid, jnp.ones((1, 1), jnp.float32)], axis=1)    # (1, D+1)
    rad1 = jnp.concatenate([rad, jnp.zeros((1, 1), jnp.float32)], axis=1)   # (1, D+1)
    mid8 = jnp.zeros((8, d1), jnp.float32).at[0:1, :].set(mid1)
    rad8 = jnp.zeros((8, d1), jnp.float32).at[0:1, :].set(rad1)

    tile_n = _choose_tile_n(n_neurons, d1, max_tile_n)
    grid = (pl.cdiv(n_neurons, tile_n),)

    # Per-step VMEM working set (double-buffered eq blocks dominate); set the
    # scoped limit explicitly instead of relying on the per-generation default.
    work_bytes = 4 * (2 * 2 * tile_n * d1 + 2 * 2 * 2 * tile_n + 2 * 2 * 8 * d1)
    vmem_limit = int(min(128 * 1024 * 1024, max(32 * 1024 * 1024, 2 * work_bytes)))

    iv_spec = pl.BlockSpec((8, d1), lambda i: (0, 0))          # constant -> stays resident
    eq_spec = pl.BlockSpec((tile_n, d1), lambda i: (i, 0))
    out_spec = pl.BlockSpec((2, tile_n), lambda i: (0, i))     # lane-dense fused lb/ub slab

    out = pl.pallas_call(
        _concretize_kernel,
        out_shape=jax.ShapeDtypeStruct((2, n_neurons), jnp.float32),
        grid_spec=pltpu.PrefetchScalarGridSpec(
            num_scalar_prefetch=0,
            grid=grid,
            in_specs=[iv_spec, iv_spec, eq_spec, eq_spec],
            out_specs=out_spec,
        ),
        compiler_params=pltpu.CompilerParams(
            dimension_semantics=("parallel",),
            vmem_limit_bytes=vmem_limit,
        ),
        cost_estimate=pl.CostEstimate(
            flops=8 * n_neurons * d1,
            transcendentals=0,
            bytes_accessed=2 * n_neurons * d1 * 4 + 2 * n_neurons * 4 + 2 * 8 * d1 * 4,
        ),
    )(mid8, rad8, l_eq, u_eq)

    # TODO(synk): if the framework can store l_eq/u_eq in bf16, pass them
    # through unchanged here and accumulate in f32 for ~2x less HBM traffic.
    return out[0, :], out[1, :]


class Reshape:
    """JAX/Pallas analogue of the torch `Reshape` interval operator.

    The symbolic equations are cloned (passed through unchanged); only the
    concrete bounds of the post interval are recomputed (concretized) and laid
    out according to the new logical output shape.
    """

    def __init__(self, output_shape):
        # output_shape == torch_layer.shape[1:] (per-example shape after reshape)
        self.output_shape = tuple(int(s) for s in output_shape)
        self.post_conc_lb = None
        self.post_conc_ub = None

    def forward(self, l_eq, u_eq, in_lb, in_ub, batch):
        clb, cub = concretize(l_eq, u_eq, in_lb, in_ub)
        self.post_conc_lb = clb.reshape((batch,) + self.output_shape)
        self.post_conc_ub = cub.reshape((batch,) + self.output_shape)
        # post interval = (same symbolic equations, new concrete bounds)
        return l_eq, u_eq, self.post_conc_lb, self.post_conc_ub


def _reference(l_eq, u_eq, in_lb, in_ub):
    lc, lb_ = l_eq[:, :-1], l_eq[:, -1:]
    uc, ub_ = u_eq[:, :-1], u_eq[:, -1:]
    clb = (jnp.maximum(lc, 0) * in_lb + jnp.minimum(lc, 0) * in_ub).sum(-1, keepdims=True) + lb_
    cub = (jnp.maximum(uc, 0) * in_ub + jnp.minimum(uc, 0) * in_lb).sum(-1, keepdims=True) + ub_
    return clb, cub


def _make_inputs(key, n, d):
    """Deterministic test data.

    * Coefficients/biases are snapped to the bf16 grid and the box is
      mid +- 0.125 with a bf16-grid midpoint, so every product in the kernel
      and in the f32 reference is exact -> tight tolerances independent of
      the MXU's internal matmul precision.
    * The box is non-negative (image-pixel style), which guarantees
      conc_lb <= conc_ub whenever u >= l elementwise.
    """
    k1, k2, k3 = jax.random.split(key, 3)
    snap = lambda x: x.astype(jnp.bfloat16).astype(jnp.float32)
    l_eq = snap(jax.random.normal(k1, (n, d + 1), dtype=jnp.float32))
    u_eq = snap(l_eq + jnp.abs(jax.random.normal(k2, (n, d + 1), dtype=jnp.float32)))
    center = snap(jax.random.uniform(k3, (1, d), dtype=jnp.float32,
                                     minval=0.25, maxval=0.75))
    in_lb = center - 0.125
    in_ub = center + 0.125
    return l_eq, u_eq, in_lb, in_ub


if __name__ == "__main__":
    # Pre-reshape tensor is NCHW [2, 4, 4, 4]; Reshape flattens each example
    # to (64,).  The input space has 32 symbolic variables.
    B, C, H, W = 2, 4, 4, 4
    D = 32
    N = B * C * H * W               # 128 neurons across the batch

    l_eq, u_eq, in_lb, in_ub = _make_inputs(jax.random.PRNGKey(0), N, D)

    layer = Reshape(output_shape=(C * H * W,))
    l_out, u_out, conc_lb, conc_ub = layer.forward(l_eq, u_eq, in_lb, in_ub, batch=B)
    jax.block_until_ready((conc_lb, conc_ub))

    ref_lb, ref_ub = _reference(l_eq, u_eq, in_lb, in_ub)
    assert conc_lb.shape == (B, C * H * W)
    assert conc_ub.shape == (B, C * H * W)
    assert jnp.allclose(conc_lb.reshape(N, 1), ref_lb, atol=1e-4, rtol=1e-4)
    assert jnp.allclose(conc_ub.reshape(N, 1), ref_ub, atol=1e-4, rtol=1e-4)
    assert bool(jnp.all(conc_lb <= conc_ub))
    assert l_out is l_eq and u_out is u_eq      # symbolic eqs pass through untouched

    # Second shape: neuron count not divisible by the tile -> exercises the
    # pl.cdiv grid with a ragged last block (replaces the old divisibility assert).
    N2, D2 = 200, 16
    l2, u2, lb2, ub2 = _make_inputs(jax.random.PRNGKey(1), N2, D2)
    clb2, cub2 = concretize(l2, u2, lb2, ub2, max_tile_n=128)
    jax.block_until_ready((clb2, cub2))
    r_lb2, r_ub2 = _reference(l2, u2, lb2, ub2)
    assert jnp.allclose(clb2.reshape(N2, 1), r_lb2, atol=1e-4, rtol=1e-4)
    assert jnp.allclose(cub2.reshape(N2, 1), r_ub2, atol=1e-4, rtol=1e-4)
    assert bool(jnp.all(clb2 <= cub2))

    print("KERNEL_OK")
</pallas_src>

<mosaic_0001>
module attributes {stable_mosaic.version = 11 : i64} {
  func.func @_concretize_kernel(%arg0: i32, %arg1: memref<8x33xf32, #tpu.memory_space<vmem>>, %arg2: memref<8x33xf32, #tpu.memory_space<vmem>>, %arg3: memref<128x33xf32, #tpu.memory_space<vmem>>, %arg4: memref<128x33xf32, #tpu.memory_space<vmem>>, %arg5: memref<2x128xf32, #tpu.memory_space<vmem>>) attributes {dimension_semantics = [#tpu.dimension_semantics<parallel>], iteration_bounds = array<i64: 1>, scalar_prefetch = 0 : i64, scratch_operands = 0 : i64, tpu.core_type = #tpu.core_type<tc>, window_params = [{pipeline_mode = #tpu.pipeline_mode<synchronous>, transform_indices = @transform_0, window_bounds = array<i64: 8, 33>}, {pipeline_mode = #tpu.pipeline_mode<synchronous>, transform_indices = @transform_1, window_bounds = array<i64: 8, 33>}, {transform_indices = @transform_2, window_bounds = array<i64: 128, 33>}, {transform_indices = @transform_3, window_bounds = array<i64: 128, 33>}, {transform_indices = @transform_4, window_bounds = array<i64: 2, 128>}]} {
    %c0 = arith.constant 0 : index
    %c0_0 = arith.constant 0 : index
    %0 = vector.load %arg1[%c0, %c0_0] : memref<8x33xf32, #tpu.memory_space<vmem>>, vector<8x33xf32>
    %c0_1 = arith.constant 0 : index
    %c0_2 = arith.constant 0 : index
    %1 = vector.load %arg2[%c0_1, %c0_2] : memref<8x33xf32, #tpu.memory_space<vmem>>, vector<8x33xf32>
    %c0_3 = arith.constant 0 : index
    %c0_4 = arith.constant 0 : index
    %2 = vector.load %arg3[%c0_3, %c0_4] : memref<128x33xf32, #tpu.memory_space<vmem>>, vector<128x33xf32>
    %c0_5 = arith.constant 0 : index
    %c0_6 = arith.constant 0 : index
    %3 = vector.load %arg4[%c0_5, %c0_6] : memref<128x33xf32, #tpu.memory_space<vmem>>, vector<128x33xf32>
    %cst = arith.constant dense<0.000000e+00> : vector<8x128xf32>
    %4 = tpu.matmul %0, %2, %cst {dimension_numbers = #tpu.dot_dimension_numbers<[1], [1], [0], [0], [0, 0, 1, 0], [], []>} : vector<8x33xf32>, vector<128x33xf32>, vector<8x128xf32> -> vector<8x128xf32>
    %5 = math.absf %2 : vector<128x33xf32>
    %cst_7 = arith.constant dense<0.000000e+00> : vector<8x128xf32>
    %6 = tpu.matmul %1, %5, %cst_7 {dimension_numbers = #tpu.dot_dimension_numbers<[1], [1], [0], [0], [0, 0, 1, 0], [], []>} : vector<8x33xf32>, vector<128x33xf32>, vector<8x128xf32> -> vector<8x128xf32>
    %7 = arith.subf %4, %6 : vector<8x128xf32>
    %cst_8 = arith.constant dense<0.000000e+00> : vector<8x128xf32>
    %8 = tpu.matmul %0, %3, %cst_8 {dimension_numbers = #tpu.dot_dimension_numbers<[1], [1], [0], [0], [0, 0, 1, 0], [], []>} : vector<8x33xf32>, vector<128x33xf32>, vector<8x128xf32> -> vector<8x128xf32>
    %9 = math.absf %3 : vector<128x33xf32>
    %cst_9 = arith.constant dense<0.000000e+00> : vector<8x128xf32>
    %10 = tpu.matmul %1, %9, %cst_9 {dimension_numbers = #tpu.dot_dimension_numbers<[1], [1], [0], [0], [0, 0, 1, 0], [], []>} : vector<8x33xf32>, vector<128x33xf32>, vector<8x128xf32> -> vector<8x128xf32>
    %11 = arith.addf %8, %10 : vector<8x128xf32>
    %12 = vector.extract_strided_slice %7 {offsets = [0, 0], sizes = [1, 128], strides = [1, 1]} : vector<8x128xf32> to vector<1x128xf32>
    %c0_10 = arith.constant 0 : index
    %c0_11 = arith.constant 0 : index
    %13 = vector.load %arg5[%c0_10, %c0_11] : memref<2x128xf32, #tpu.memory_space<vmem>>, vector<1x128xf32>
    tpu.vector_store %arg5[%c0_10, %c0_11], %12 {strides = array<i32>} : memref<2x128xf32, #tpu.memory_space<vmem>>, vector<1x128xf32>,
    %14 = vector.extract_strided_slice %11 {offsets = [0, 0], sizes = [1, 128], strides = [1, 1]} : vector<8x128xf32> to vector<1x128xf32>
    %c1 = arith.constant 1 : index
    %c0_12 = arith.constant 0 : index
    %15 = vector.load %arg5[%c1, %c0_12] : memref<2x128xf32, #tpu.memory_space<vmem>>, vector<1x128xf32>
    tpu.vector_store %arg5[%c1, %c0_12], %14 {strides = array<i32>} : memref<2x128xf32, #tpu.memory_space<vmem>>, vector<1x128xf32>,
    return
  }
  func.func @transform_0(%arg0: i32) -> (i32, i32) {
    %c0_i32 = arith.constant 0 : i32
    %c0_i32_0 = arith.constant 0 : i32
    %c0_i32_1 = arith.constant 0 : i32
    return %c0_i32, %c0_i32_0 : i32, i32
  }
  func.func @transform_1(%arg0: i32) -> (i32, i32) {
    %c0_i32 = arith.constant 0 : i32
    %c0_i32_0 = arith.constant 0 : i32
    %c0_i32_1 = arith.constant 0 : i32
    return %c0_i32, %c0_i32_0 : i32, i32
  }
  func.func @transform_2(%arg0: i32) -> (i32, i32) {
    %c0_i32 = arith.constant 0 : i32
    %c0_i32_0 = arith.constant 0 : i32
    return %arg0, %c0_i32 : i32, i32
  }
  func.func @transform_3(%arg0: i32) -> (i32, i32) {
    %c0_i32 = arith.constant 0 : i32
    %c0_i32_0 = arith.constant 0 : i32
    return %arg0, %c0_i32 : i32, i32
  }
  func.func @transform_4(%arg0: i32) -> (i32, i32) {
    %c0_i32 = arith.constant 0 : i32
    %c0_i32_0 = arith.constant 0 : i32
    return %c0_i32, %arg0 : i32, i32
  }
}

</mosaic_0001>

<bundles_post_ra>
// kernel: tpu_custom_call.1
= control target key start
LH: loop header
LB: loop body
LE: loop exit
PB: predicated region body
PF: predicated region fallthrough
CT: control target
= control target key end

     0   :  { %vm52_vm0 = vcmask 269312   ;;  %v881_v2 = vmov 0.0   ;;  %vm882_vm1 = vmmov 0   ;;  %s1162_s0 = inlined_call_operand.vmem [shape: f32[8,33], index: 0, kind: input, shape index: {}]   ;;  %s1163_s1 = inlined_call_operand.vmem [shape: f32[8,33], index: 1, kind: input, shape index: {}]   ;;  %s1164_s2 = inlined_call_operand.vmem [shape: f32[128,33], index: 2, kind: input, shape index: {}]   ;;  %s1165_s3 = inlined_call_operand.vmem [shape: f32[128,33], index: 3, kind: input, shape index: {}]   ;;  %s1166_s4 = inlined_call_operand.hbm [shape: f32[2,128], index: 4, kind: output, shape index: {}]  }
   0x1   :  { %v35_v0 = vld [vmem:[%s1164_s2 + $0x78] sm:$0xff]  ;;  %v34_v1 = vld [vmem:[%s1164_s2 + $0x70] sm:$0xff]  ;;  %716 = vmatprep.subr.mxu0 %v881_v2  ;;  %751 = vmatprep.subr.mxu1 %v881_v2  ;;  %v33_v5 = vld [vmem:[%s1164_s2 + $0x68] sm:$0xff] }
   0x2   :  { %v189_v3 = vand.u32 2147483647, %v35_v0  ;;  %717 = vmatpush3.xpose.msk.msra.mxu0 %vm52_vm0, %v35_v0  ;;  %748 = vmatprep.mubr.msk.f32.mxu0 %vm882_vm1, %v881_v2  ;;  %v188_v4 = vand.u32 2147483647, %v34_v1  ;;  %v187_v6 = vand.u32 2147483647, %v33_v5 }
   0x3   :  { %718 = vmatprep.subr.mxu0 %v881_v2  ;;  %783 = vmatprep.mubr.msk.f32.mxu1 %vm882_vm1, %v881_v2  ;;  %v32_v7 = vld [vmem:[%s1164_s2 + $0x60] sm:$0xff]  ;;  %v31_v9 = vld [vmem:[%s1164_s2 + $0x58] sm:$0xff]  ;;  %v30_v11 = vld [vmem:[%s1164_s2 + $0x50] sm:$0xff] }
   0x4   :  { %752 = vmatpush3.xpose.msk.msra.mxu1 %vm52_vm0, %v189_v3  ;;  %v186_v8 = vand.u32 2147483647, %v32_v7  ;;  %v185_v10 = vand.u32 2147483647, %v31_v9  ;;  %v184_v12 = vand.u32 2147483647, %v30_v11 }
   0x5   :  { %753 = vmatprep.subr.mxu1 %v881_v2  ;;  %v29_v13 = vld [vmem:[%s1164_s2 + $0x48] sm:$0xff] }
   0x6   :  { %719 = vmatpush3.xpose.msk.msra.mxu0 %vm52_vm0, %v34_v1 }
   0x7   :  { %720 = vmatprep.subr.mxu0 %v881_v2 }
   0x8   :  { %754 = vmatpush3.xpose.msk.msra.mxu1 %vm52_vm0, %v188_v4 }
   0x9   :  { %755 = vmatprep.subr.mxu1 %v881_v2 }
   0xa   :  { %721 = vmatpush3.xpose.msk.msra.mxu0 %vm52_vm0, %v33_v5 }
   0xb   :  { %722 = vmatprep.subr.mxu0 %v881_v2 }
   0xc   :  { %756 = vmatpush3.xpose.msk.msra.mxu1 %vm52_vm0, %v187_v6 }
   0xd   :  { %757 = vmatprep.subr.mxu1 %v881_v2 }
   0xe   :  { %723 = vmatpush3.xpose.msk.msra.mxu0 %vm52_vm0, %v32_v7 }
   0xf   :  { %724 = vmatprep.subr.mxu0 %v881_v2 }
  0x10   :  { %758 = vmatpush3.xpose.msk.msra.mxu1 %vm52_vm0, %v186_v8 }
  0x11   :  { %759 = vmatprep.subr.mxu1 %v881_v2 }
  0x12   :  { %725 = vmatpush3.xpose.msk.msra.mxu0 %vm52_vm0, %v31_v9 }
  0x13   :  { %726 = vmatprep.subr.mxu0 %v881_v2 }
  0x14   :  { %760 = vmatpush3.xpose.msk.msra.mxu1 %vm52_vm0, %v185_v10 }
  0x15   :  { %761 = vmatprep.subr.mxu1 %v881_v2 }
  0x16   :  { %9 = vsyncpa [#allocation3], 0  ;;  %727 = vmatpush3.xpose.msk.msra.mxu0 %vm52_vm0, %v30_v11  ;;  %v183_v14 = vand.u32 2147483647, %v29_v13  ;;  %v28_v15 = vld [vmem:[%s1164_s2 + $0x40] sm:$0xff]  ;;  %v27_v17 = vld [vmem:[%s1164_s2 + $0x38] sm:$0xff] }
  0x17   :  { %728 = vmatprep.subr.mxu0 %v881_v2  ;;  %v182_v16 = vand.u32 2147483647, %v28_v15  ;;  %v181_v18 = vand.u32 2147483647, %v27_v17  ;;  %v26_v19 = vld [vmem:[%s1164_s2 + $0x30] sm:$0xff]  ;;  %v25_v21 = vld [vmem:[%s1164_s2 + $0x28] sm:$0xff] }
  0x18   :  { %762 = vmatpush3.xpose.msk.msra.mxu1 %vm52_vm0, %v184_v12  ;;  %v180_v20 = vand.u32 2147483647, %v26_v19  ;;  %v179_v22 = vand.u32 2147483647, %v25_v21  ;;  %v24_v23 = vld [vmem:[%s1164_s2 + $0x20] sm:$0xff]  ;;  %v23_v25 = vld [vmem:[%s1164_s2 + $0x18] sm:$0xff] }
  0x19   :  { %763 = vmatprep.subr.mxu1 %v881_v2  ;;  %v178_v24 = vand.u32 2147483647, %v24_v23  ;;  %v177_v26 = vand.u32 2147483647, %v23_v25  ;;  %v22_v27 = vld [vmem:[%s1164_s2 + $0x10] sm:$0xff]  ;;  %v21_v29 = vld [vmem:[%s1164_s2 + $0x8] sm:$0xff] }
  0x1a   :  { %729 = vmatpush3.xpose.msk.msra.mxu0 %vm52_vm0, %v29_v13  ;;  %v176_v28 = vand.u32 2147483647, %v22_v27  ;;  %v175_v30 = vand.u32 2147483647, %v21_v29  ;;  %v20_v31 = vld [vmem:[%s1164_s2] sm:$0xff]  ;;  %v51_v33 = vld [vmem:[%s1165_s3 + $0x78] sm:$0xff] }
  0x1b   :  { %730 = vmatprep.subr.mxu0 %v881_v2  ;;  %v174_v32 = vand.u32 2147483647, %v20_v31  ;;  %v1030_v34 = vld [vmem:[%s1162_s0] sm:$0xff]  ;;  %v327_v35 = vand.u32 2147483647, %v51_v33  ;;  %v50_v37 = vld [vmem:[%s1165_s3 + $0x70] sm:$0xff] }
  0x1c   :  { %764 = vmatpush3.xpose.msk.msra.mxu1 %vm52_vm0, %v183_v14  ;;  %v1037_v36 = vld [vmem:[%s1163_s1] sm:$0xff]  ;;  %v326_v38 = vand.u32 2147483647, %v50_v37  ;;  %v49_v39 = vld [vmem:[%s1165_s3 + $0x68] sm:$0xff]  ;;  %v47_v43 = vld [vmem:[%s1165_s3 + $0x58] sm:$0xff] }
  0x1d   :  { %765 = vmatprep.subr.mxu1 %v881_v2  ;;  %v325_v40 = vand.u32 2147483647, %v49_v39  ;;  %v48_v41 = vld [vmem:[%s1165_s3 + $0x60] sm:$0xff]  ;;  %v323_v44 = vand.u32 2147483647, %v47_v43  ;;  %v46_v45 = vld [vmem:[%s1165_s3 + $0x50] sm:$0xff] }
  0x1e   :  { %731 = vmatpush3.xpose.msk.msra.mxu0 %vm52_vm0, %v28_v15  ;;  %v324_v42 = vand.u32 2147483647, %v48_v41  ;;  %v322_v46 = vand.u32 2147483647, %v46_v45  ;;  %v45_v47 = vld [vmem:[%s1165_s3 + $0x48] sm:$0xff]  ;;  %v44_v49 = vld [vmem:[%s1165_s3 + $0x40] sm:$0xff] }
  0x1f   :  { %732 = vmatprep.subr.mxu0 %v881_v2  ;;  %v321_v48 = vand.u32 2147483647, %v45_v47  ;;  %v320_v50 = vand.u32 2147483647, %v44_v49  ;;  %v43_v51 = vld [vmem:[%s1165_s3 + $0x38] sm:$0xff]  ;;  %v42_v53 = vld [vmem:[%s1165_s3 + $0x30] sm:$0xff] }
  0x20   :  { %766 = vmatpush3.xpose.msk.msra.mxu1 %vm52_vm0, %v182_v16  ;;  %v319_v52 = vand.u32 2147483647, %v43_v51  ;;  %v318_v54 = vand.u32 2147483647, %v42_v53  ;;  %v41_v55 = vld [vmem:[%s1165_s3 + $0x28] sm:$0xff]  ;;  %v40_v57 = vld [vmem:[%s1165_s3 + $0x20] sm:$0xff] }
  0x21   :  { %767 = vmatprep.subr.mxu1 %v881_v2  ;;  %v317_v56 = vand.u32 2147483647, %v41_v55  ;;  %v316_v58 = vand.u32 2147483647, %v40_v57  ;;  %v39_v59 = vld [vmem:[%s1165_s3 + $0x18] sm:$0xff]  ;;  %v38_v61 = vld [vmem:[%s1165_s3 + $0x10] sm:$0xff] }
  0x22   :  { %733 = vmatpush3.xpose.msk.msra.mxu0 %vm52_vm0, %v27_v17  ;;  %v315_v60 = vand.u32 2147483647, %v39_v59  ;;  %v314_v62 = vand.u32 2147483647, %v38_v61  ;;  %v37_v63 = vld [vmem:[%s1165_s3 + $0x8] sm:$0xff]  ;;  %v36_v1 = vld [vmem:[%s1165_s3] sm:$0xff] }
  0x23   :  { %734 = vmatprep.subr.mxu0 %v881_v2  ;;  %v313_v0 = vand.u32 2147483647, %v37_v63  ;;  %v312_v3 = vand.u32 2147483647, %v36_v1  ;;  %s883_s3 = smov [#allocation2]  }
  0x24   :  { %768 = vmatpush3.xpose.msk.msra.mxu1 %vm52_vm0, %v181_v18  ;;  %s572_s27 = sshll.u32 %s883_s3, 4  ;;  %s573_s27 = int_to_ptr.vmem [resolvable:$true] %s572_s27 }
  0x25   :  { %769 = vmatprep.subr.mxu1 %v881_v2  ;;  %s859_s0 = scalar_lea.vmem %s573_s27, 32  ;;  %p864_p1 = scmp.lt.s32.totalorder %s573_s27, %s573_s27 }
  0x26   :  { %735 = vmatpush3.xpose.msk.msra.mxu0 %vm52_vm0, %v26_v19  ;;  %p860_p0 = scmp.ne.s32.totalorder %s573_s27, %s859_s0  ;;  %p865_p2 = scmp.lt.s32.totalorder %s859_s0, %s859_s0 }
  0x27   :  { %736 = vmatprep.subr.mxu0 %v881_v2 }
  0x28   :  { %770 = vmatpush3.xpose.msk.msra.mxu1 %vm52_vm0, %v180_v20  ;;  %p866_p3 = por %p865_p2, %p864_p1 }
  0x29   :  { %771 = vmatprep.subr.mxu1 %v881_v2 }
  0x2a   :  { %737 = vmatpush3.xpose.msk.msra.mxu0 %vm52_vm0, %v25_v21  ;;  %p867_p4 = pnand %p866_p3, %p860_p0 }
  0x2b   :  { %738 = vmatprep.subr.mxu0 %v881_v2 }
  0x2c   :  { %772 = vmatpush3.xpose.msk.msra.mxu1 %vm52_vm0, %v179_v22 }
  0x2d   :  { %773 = vmatprep.subr.mxu1 %v881_v2 }
  0x2e   :  { %739 = vmatpush3.xpose.msk.msra.mxu0 %vm52_vm0, %v24_v23 }
  0x2f   :  { %740 = vmatprep.subr.mxu0 %v881_v2 }
  0x30   :  { %774 = vmatpush3.xpose.msk.msra.mxu1 %vm52_vm0, %v178_v24 }
  0x31   :  { %775 = vmatprep.subr.mxu1 %v881_v2 }
  0x32   :  { %741 = vmatpush3.xpose.msk.msra.mxu0 %vm52_vm0, %v23_v25 }
  0x33   :  { %742 = vmatprep.subr.mxu0 %v881_v2 }
  0x34   :  { %776 = vmatpush3.xpose.msk.msra.mxu1 %vm52_vm0, %v177_v26 }
  0x35   :  { %777 = vmatprep.subr.mxu1 %v881_v2 }
  0x36   :  { %743 = vmatpush3.xpose.msk.msra.mxu0 %vm52_vm0, %v22_v27 }
  0x37   :  { %744 = vmatprep.subr.mxu0 %v881_v2 }
  0x38   :  { %778 = vmatpush3.xpose.msk.msra.mxu1 %vm52_vm0, %v176_v28 }
  0x39   :  { %779 = vmatprep.subr.mxu1 %v881_v2 }
  0x3a   :  { %745 = vmatpush3.xpose.msk.msra.mxu0 %vm52_vm0, %v21_v29 }
  0x3b   :  { %746 = vmatprep.subr.mxu0 %v881_v2 }
  0x3c   :  { %780 = vmatpush3.xpose.msk.msra.mxu1 %vm52_vm0, %v175_v30 }
  0x3d   :  { %781 = vmatprep.subr.mxu1 %v881_v2 }
  0x3e   :  { %747 = vmatpush3.xpose.msk.msra.mxu0 %vm52_vm0, %v20_v31 }
  0x3f   :  { %786 = vmatprep.subr.mxu0 %v881_v2 }
  0x40   :  { %782 = vmatpush3.xpose.msk.msra.mxu1 %vm52_vm0, %v174_v32 }
  0x41   :  { %821 = vmatprep.subr.mxu1 %v881_v2  ;;  %749 = vmatmul.mubr.msk.f32.vlgmr.msra.gmra.mxu0 %vm52_vm0, %v1030_v34 }
  0x42   :  { %787 = vmatpush3.xpose.msk.msra.mxu0 %vm52_vm0, %v327_v35  ;;  %818 = vmatprep.mubr.msk.f32.mxu0 %vm882_vm1, %v881_v2 }
  0x43   :  { %784 = vmatmul.mubr.msk.f32.vlgmr.msra.gmra.mxu1 %vm52_vm0, %v1037_v36  ;;  %788 = vmatprep.subr.mxu0 %v881_v2 }
  0x44   :  { %822 = vmatpush3.xpose.msk.msra.mxu1 %vm52_vm0, %v51_v33  ;;  %853 = vmatprep.mubr.msk.f32.mxu1 %vm882_vm1, %v881_v2 }
  0x45   :  { %823 = vmatprep.subr.mxu1 %v881_v2 }
  0x46   :  { %789 = vmatpush3.xpose.msk.msra.mxu0 %vm52_vm0, %v326_v38 }
  0x47   :  { %790 = vmatprep.subr.mxu0 %v881_v2 }
  0x48   :  { %824 = vmatpush3.xpose.msk.msra.mxu1 %vm52_vm0, %v50_v37 }
  0x49   :  { %825 = vmatprep.subr.mxu1 %v881_v2 }
  0x4a   :  { %791 = vmatpush3.xpose.msk.msra.mxu0 %vm52_vm0, %v325_v40 }
  0x4b   :  { %792 = vmatprep.subr.mxu0 %v881_v2 }
  0x4c   :  { %826 = vmatpush3.xpose.msk.msra.mxu1 %vm52_vm0, %v49_v39 }
  0x4d   :  { %827 = vmatprep.subr.mxu1 %v881_v2 }
  0x4e   :  { %793 = vmatpush3.xpose.msk.msra.mxu0 %vm52_vm0, %v324_v42 }
  0x4f   :  { %794 = vmatprep.subr.mxu0 %v881_v2 }
  0x50   :  { %828 = vmatpush3.xpose.msk.msra.mxu1 %vm52_vm0, %v48_v41 }
  0x51   :  { %829 = vmatprep.subr.mxu1 %v881_v2 }
  0x52   :  { %795 = vmatpush3.xpose.msk.msra.mxu0 %vm52_vm0, %v323_v44 }
  0x53   :  { %796 = vmatprep.subr.mxu0 %v881_v2 }
  0x54   :  { %830 = vmatpush3.xpose.msk.msra.mxu1 %vm52_vm0, %v47_v43 }
  0x55   :  { %831 = vmatprep.subr.mxu1 %v881_v2 }
  0x56   :  { %797 = vmatpush3.xpose.msk.msra.mxu0 %vm52_vm0, %v322_v46 }
  0x57   :  { %798 = vmatprep.subr.mxu0 %v881_v2 }
  0x58   :  { %832 = vmatpush3.xpose.msk.msra.mxu1 %vm52_vm0, %v46_v45 }
  0x59   :  { %833 = vmatprep.subr.mxu1 %v881_v2 }
  0x5a   :  { %799 = vmatpush3.xpose.msk.msra.mxu0 %vm52_vm0, %v321_v48 }
  0x5b   :  { %800 = vmatprep.subr.mxu0 %v881_v2 }
  0x5c   :  { %834 = vmatpush3.xpose.msk.msra.mxu1 %vm52_vm0, %v45_v47 }
  0x5d   :  { %835 = vmatprep.subr.mxu1 %v881_v2 }
  0x5e   :  { %801 = vmatpush3.xpose.msk.msra.mxu0 %vm52_vm0, %v320_v50 }
  0x5f   :  { %802 = vmatprep.subr.mxu0 %v881_v2 }
  0x60   :  { %836 = vmatpush3.xpose.msk.msra.mxu1 %vm52_vm0, %v44_v49 }
  0x61   :  { %837 = vmatprep.subr.mxu1 %v881_v2 }
  0x62   :  { %803 = vmatpush3.xpose.msk.msra.mxu0 %vm52_vm0, %v319_v52 }
  0x63   :  { %804 = vmatprep.subr.mxu0 %v881_v2 }
  0x64   :  { %838 = vmatpush3.xpose.msk.msra.mxu1 %vm52_vm0, %v43_v51 }
  0x65   :  { %839 = vmatprep.subr.mxu1 %v881_v2 }
  0x66   :  { %805 = vmatpush3.xpose.msk.msra.mxu0 %vm52_vm0, %v318_v54 }
  0x67   :  { %806 = vmatprep.subr.mxu0 %v881_v2 }
  0x68   :  { %840 = vmatpush3.xpose.msk.msra.mxu1 %vm52_vm0, %v42_v53 }
  0x69   :  { %841 = vmatprep.subr.mxu1 %v881_v2 }
  0x6a   :  { %807 = vmatpush3.xpose.msk.msra.mxu0 %vm52_vm0, %v317_v56 }
  0x6b   :  { %808 = vmatprep.subr.mxu0 %v881_v2 }
  0x6c   :  { %842 = vmatpush3.xpose.msk.msra.mxu1 %vm52_vm0, %v41_v55 }
  0x6d   :  { %843 = vmatprep.subr.mxu1 %v881_v2 }
  0x6e   :  { %809 = vmatpush3.xpose.msk.msra.mxu0 %vm52_vm0, %v316_v58 }
  0x6f   :  { %810 = vmatprep.subr.mxu0 %v881_v2 }
  0x70   :  { %844 = vmatpush3.xpose.msk.msra.mxu1 %vm52_vm0, %v40_v57 }
  0x71   :  { %845 = vmatprep.subr.mxu1 %v881_v2 }
  0x72   :  { %811 = vmatpush3.xpose.msk.msra.mxu0 %vm52_vm0, %v315_v60 }
  0x73   :  { %812 = vmatprep.subr.mxu0 %v881_v2 }
  0x74   :  { %846 = vmatpush3.xpose.msk.msra.mxu1 %vm52_vm0, %v39_v59 }
  0x75   :  { %847 = vmatprep.subr.mxu1 %v881_v2 }
  0x76   :  { %813 = vmatpush3.xpose.msk.msra.mxu0 %vm52_vm0, %v314_v62 }
  0x77   :  { %814 = vmatprep.subr.mxu0 %v881_v2 }
  0x78   :  { %848 = vmatpush3.xpose.msk.msra.mxu1 %vm52_vm0, %v38_v61 }
  0x79   :  { %849 = vmatprep.subr.mxu1 %v881_v2 }
  0x7a   :  { %815 = vmatpush3.xpose.msk.msra.mxu0 %vm52_vm0, %v313_v0 }
  0x7b   :  { %816 = vmatprep.subr.mxu0 %v881_v2 }
  0x7c   :  { %850 = vmatpush3.xpose.msk.msra.mxu1 %vm52_vm0, %v37_v63 }
  0x7d   :  { %851 = vmatprep.subr.mxu1 %v881_v2 }
  0x7e   :  { %817 = vmatpush3.xpose.msk.msra.mxu0 %vm52_vm0, %v312_v3 }
  0x80   :  { %852 = vmatpush3.xpose.msk.msra.mxu1 %vm52_vm0, %v36_v1 }
  0x81   :  { %819 = vmatmul.mubr.msk.f32.vlgmr.msra.gmra.mxu0 %vm52_vm0, %v1037_v36 }
  0x83   :  { %854 = vmatmul.mubr.msk.f32.vlgmr.msra.gmra.mxu1 %vm52_vm0, %v1030_v34 }
 0x101   :  { %v170_v4 = vpop.f32.mrf.mxu0 }
 0x103   :  { %v307_v5 = vpop.f32.mrf.mxu1  ;;  %v750_v7 = vpop.f32.mrf.mxu0 }
 0x104   :  { %v311_v6 = vsub.f32 %v170_v4, %v307_v5 }
 0x105   :  { %v785_v8 = vpop.f32.mrf.mxu1 }
 0x106   :  { %564 = vst [vmem:[#allocation2] sm:$0x1] %v311_v6 }
 0x141   :  { %v442_v9 = vpop.f32.mrf.mxu0 }
 0x143   :  { %v560_v2 = vpop.f32.mrf.mxu1  ;;  %v820_v11 = vpop.f32.mrf.mxu0 }
 0x144   :  { %v561_v10 = vadd.f32 %v560_v2, %v442_v9 }
 0x145   :  { %v855_v12 = vpop.f32.mrf.mxu1 }
 0x146   :  { %565 = vst [vmem:[#allocation2 + $0x1] sm:$0x1] %v561_v10 }
 0x147   :  { %870 = shalt.err (!%p867_p4)
}
 0x148   :  { %575 = dma.vmem_to_hbm [thread:$0]  %s573_s27, 32, %s1166_s4, [#allocation3]  }
 0x149   :  { %879 = dma.done.wait [#allocation3], 32  }
 0x14a   :  { %880 = vsyncadd [#allocation3], 4294967264 }
 0x14b   :  { %579 = vsyncpa [#allocation3], 1 }

</bundles_post_ra>
